<compile_context>
chip_gen: v5e
topology: v5e:2x2
jax: 0.10.0
libtpu: 0.0.40
codegen_flags: <defaults>
</compile_context>

<pallas_src>
import jax
import jax.numpy as jnp
from jax.experimental import pallas as pl
from jax.experimental.pallas import tpu as pltpu


def _round_up(a, m):
    return (a + m - 1) // m * m


def _largest_divisor_leq(n, cap):
    cap = max(1, min(n, cap))
    for d in range(cap, 0, -1):
        if n % d == 0:
            return d
    return 1


def _nbytes(arrs):
    return int(sum(int(a.size) * jnp.dtype(a.dtype).itemsize for a in arrs))


def _mm(a, w):
    # Cast the activation to the weight dtype (weights may be pre-cast to bf16
    # in the wrapper on v6e/v7x); always accumulate in f32 on the MXU.
    return jnp.dot(a.astype(w.dtype), w, preferred_element_type=jnp.float32)


# ---------------------------------------------------------------------------
# Kernel 1: non-recurrent "pre" phase (parallel over row blocks of T*Bp rows).
# Emits one packed, lane-dense GRU input projection gi (biases folded in).
# ---------------------------------------------------------------------------
def pre_kernel(
    x_ref, p_ref,
    w_pic, b_pic, w_lin, b_lin, w_h1, b_h1, w_cat_x, w_cat_p, b_cat,
    w_ih, b_ih,
    gi_ref,
):
    # picnet: Linear(512, 100) + ReLU
    pfeat = jnp.maximum(_mm(p_ref[...], w_pic[...]) + b_pic[...], 0.0)
    # x = tanh(linear(x)); hidden stack (one hidden layer at these sizes)
    x1 = jnp.tanh(_mm(x_ref[...], w_lin[...]) + b_lin[...])
    x2 = jnp.tanh(_mm(x1, w_h1[...]) + b_h1[...])
    # cat((x, p)) @ W_cat == x @ W_cat[:hs] + p @ W_cat[hs:]  (split matmul,
    # avoids an in-kernel lane concatenate)
    feat = jnp.tanh(_mm(x2, w_cat_x[...]) + _mm(pfeat, w_cat_p[...]) + b_cat[...])
    # Fused GRU input projection [r|z|n|pad] -> single 128-multiple-wide store.
    gi_ref[...] = _mm(feat, w_ih[...]) + b_ih[...]


# ---------------------------------------------------------------------------
# Kernel 2: GRU recurrence + fused heads epilogue.
# Grid = (batch_blocks ["parallel"], time_blocks ["arbitrary"]).
# Hidden state is carried across time blocks in VMEM scratch; the per-step
# recurrent matmul is ONE fused (Bc,H)@(H,3Hp) MXU op.
# ---------------------------------------------------------------------------
def gru_heads_kernel(
    hx_ref, gi_ref,
    w_hh, b_hh, w_act, b_act, w_c1, b_c1, w_mu_p, w_sig_p, w_c2_p, b_head,
    out_ref, *scratch,
):
    nc = len(scratch) // 2            # number of interleaved batch chunks
    h_scrs = scratch[:nc]             # nc x (Bc, H)   carried hidden state
    hist_scrs = scratch[nc:]          # nc x (KG, Bc, H) per-block history
    KG, Bb, _ = gi_ref.shape
    Bc = h_scrs[0].shape[0]
    H = hx_ref.shape[1]
    P = out_ref.shape[2]

    @pl.when(pl.program_id(1) == 0)
    def _():
        for c in range(nc):
            h_scrs[c][...] = hx_ref[c * Bc:(c + 1) * Bc, :]

    # Grid-invariant weight loads hoisted out of the unrolled loop.
    whh = w_hh[...]
    bhh = b_hh[...]

    def step(t, carry):
        gi_t = gi_ref[t]                                   # (Bb, 3Hp)
        new = []
        for c in range(nc):                                # interleaved chunks (ILP)
            h = carry[c]
            gig = gi_t[c * Bc:(c + 1) * Bc, :]
            gh = _mm(h, whh) + bhh                         # one fused MXU op
            rz = jax.nn.sigmoid(gig[:, :2 * H] + gh[:, :2 * H])
            r = rz[:, :H]
            z = rz[:, H:2 * H]
            n = jnp.tanh(gig[:, 2 * H:3 * H] + r * gh[:, 2 * H:3 * H])
            hn = (1.0 - z) * n + z * h                     # PyTorch GRU update
            hist_scrs[c][t] = hn
            new.append(hn)
        return tuple(new)

    carry0 = tuple(h_scrs[c][...] for c in range(nc))
    carry = jax.lax.fori_loop(0, KG, step, carry0, unroll=True)
    for c in range(nc):
        h_scrs[c][...] = carry[c]                          # carry across time blocks

    # ---- heads fused into the epilogue (no h_hist HBM round trip) ----------
    w_act_v = w_act[...]; b_act_v = b_act[...]
    w_c1_v = w_c1[...];  b_c1_v = b_c1[...]
    w_mu_v = w_mu_p[...]; w_sig_v = w_sig_p[...]; w_c2_v = w_c2_p[...]
    b_head_v = b_head[...]
    for c in range(nc):
        hist = hist_scrs[c][...].reshape(KG * Bc, H)
        actor = jnp.tanh(_mm(hist, w_act_v) + b_act_v)
        c_hid = jnp.maximum(_mm(hist, w_c1_v) + b_c1_v, 0.0)
        out = (_mm(actor, w_mu_v) + _mm(hist, w_sig_v)
               + _mm(c_hid, w_c2_v) + b_head_v).astype(out_ref.dtype)
        if nc == 1:
            out_ref[...] = out.reshape(KG, Bc, P)
        else:
            out_ref[:, c * Bc:(c + 1) * Bc, :] = out.reshape(KG, Bc, P)


# ---------------------------------------------------------------------------
# Wrapper
# ---------------------------------------------------------------------------
def acnet_cell_forward(x, p, hx, params, *, matmul_dtype=jnp.float32):
    T, B, F_in = x.shape
    PD = p.shape[-1]
    H = hx.shape[-1]
    A = params["w_mu"].shape[-1]          # num_actions
    f32 = jnp.float32

    # ---- pad batch to a multiple of 8 sublanes; fold T into the row dim ----
    Bp = _round_up(B, 8)
    if Bp != B:
        bpad = ((0, 0), (0, Bp - B), (0, 0))
        x = jnp.pad(x, bpad)
        p = jnp.pad(p, bpad)
        hx = jnp.pad(hx, bpad)
    M = T * Bp
    xf = x.reshape(M, F_in)
    pf = p.reshape(M, PD)
    h0 = hx[0]                            # (Bp, H)

    def wc(w):                            # matmul-operand dtype (f32 / bf16)
        return w.astype(matmul_dtype)

    # ---- fused, lane-padded GRU weights (gate order r, z, n) ---------------
    THp = _round_up(3 * H, 128)           # lane-dense width for gi / gh
    w_ih_p = jnp.zeros((params["w_ih"].shape[0], THp), f32).at[:, :3 * H].set(params["w_ih"])
    b_ih_p = jnp.zeros((1, THp), f32).at[:, :3 * H].set(params["b_ih"])
    w_hh_p = jnp.zeros((H, THp), f32).at[:, :3 * H].set(params["w_hh"])
    b_hh_p = jnp.zeros((1, THp), f32).at[:, :3 * H].set(params["b_hh"])

    # ---- pack head weights into one lane-dense (., P) output layout --------
    # Columns: [0:A) mu | [A:2A) sigma | [2A:2A+1) critic | zeros
    P = _round_up(2 * A + 1, 128)
    actor_size = params["w_mu"].shape[0]
    c1 = params["w_c2"].shape[0]
    w_mu_p = jnp.zeros((actor_size, P), f32).at[:, :A].set(params["w_mu"])
    w_sig_p = jnp.zeros((H, P), f32).at[:, A:2 * A].set(params["w_sig"])
    w_c2_p = jnp.zeros((c1, P), f32).at[:, 2 * A:2 * A + 1].set(params["w_c2"])
    b_head = (jnp.zeros((1, P), f32)
              .at[:, :A].set(params["b_mu"])
              .at[:, A:2 * A].set(params["b_sig"])
              .at[:, 2 * A:2 * A + 1].set(params["b_c2"]))

    def const_spec(arr, ngrid):
        nd = arr.ndim
        # Grid-invariant block: fetched once (block index never changes).
        if ngrid == 1:
            return pl.BlockSpec(arr.shape, lambda i, _nd=nd: (0,) * _nd)
        return pl.BlockSpec(arr.shape, lambda i, j, _nd=nd: (0,) * _nd)

    # ---- VMEM-budget-driven tile selection ----------------------------------
    VMEM_BUDGET = 24 << 20                # working-set target; safe for v7x 64 MiB

    # Phase 1: rows per block (aim for large, roofline-friendly blocks).
    row_bytes = 4 * (F_in + PD + THp)                     # in + in + out per row
    rows_cap = min(max(Bp, VMEM_BUDGET // (2 * row_bytes)), 2048)
    KC = _largest_divisor_leq(T, max(1, rows_cap // Bp))
    if KC == T and T > 1 and KC * Bp >= 1024:
        # keep >=2 grid steps when blocks are already large (megacore sharding)
        KC = _largest_divisor_leq(T, T // 2)
    RM = KC * Bp

    # Phase 2: batch sharding (v7x megacore) + intra-block interleave chunks.
    NB = 2 if (Bp >= 16 and Bp % 16 == 0) else 1
    Bb = Bp // NB
    NC = 2 if (Bb >= 16 and Bb % 16 == 0) else 1
    Bc = Bb // NC

    per_t_bytes = Bb * (2 * 4 * THp + 2 * 4 * P + 4 * H)  # gi dbuf + out dbuf + hist
    KG = _largest_divisor_leq(T, max(1, min(32, VMEM_BUDGET // max(1, per_t_bytes))))

    # ---- phase 1: non-recurrent precompute (parallel) ------------------------
    pre_weights = [
        wc(params["w_pic"]), params["b_pic"], wc(params["w_lin"]), params["b_lin"],
        wc(params["w_h1"]), params["b_h1"], wc(params["w_cat_x"]), wc(params["w_cat_p"]),
        params["b_cat"], wc(w_ih_p), b_ih_p,
    ]
    vlim_pre = int(max(16 << 20, 2 * RM * row_bytes + 2 * _nbytes(pre_weights) + (4 << 20)))
    gi = pl.pallas_call(
        pre_kernel,
        out_shape=jax.ShapeDtypeStruct((M, THp), jnp.float32),
        grid_spec=pltpu.PrefetchScalarGridSpec(
            num_scalar_prefetch=0,
            grid=(M // RM,),
            in_specs=[pl.BlockSpec((RM, F_in), lambda i: (i, 0)),
                      pl.BlockSpec((RM, PD), lambda i: (i, 0))]
                     + [const_spec(w, 1) for w in pre_weights],
            out_specs=pl.BlockSpec((RM, THp), lambda i: (i, 0)),
        ),
        compiler_params=pltpu.CompilerParams(
            dimension_semantics=("parallel",),
            vmem_limit_bytes=vlim_pre,
        ),
    )(xf, pf, *pre_weights)
    gi3 = gi.reshape(T, Bp, THp)

    # ---- phase 2: sequential GRU recurrence + fused heads --------------------
    gru_weights = [
        wc(w_hh_p), b_hh_p, wc(params["w_act"]), params["b_act"],
        wc(params["w_c1"]), params["b_c1"],
        wc(w_mu_p), wc(w_sig_p), wc(w_c2_p), b_head,
    ]
    ws_gru = KG * per_t_bytes + Bb * H * 4
    vlim_gru = int(max(16 << 20, ws_gru + 2 * _nbytes(gru_weights) + (4 << 20)))
    heads = pl.pallas_call(
        gru_heads_kernel,
        out_shape=jax.ShapeDtypeStruct((T, Bp, P), jnp.float32),
        grid_spec=pltpu.PrefetchScalarGridSpec(
            num_scalar_prefetch=0,
            grid=(NB, T // KG),
            in_specs=[pl.BlockSpec((Bb, H), lambda b, t: (b, 0)),
                      pl.BlockSpec((KG, Bb, THp), lambda b, t: (t, b, 0))]
                     + [const_spec(w, 2) for w in gru_weights],
            out_specs=pl.BlockSpec((KG, Bb, P), lambda b, t: (t, b, 0)),
            scratch_shapes=[pltpu.VMEM((Bc, H), jnp.float32) for _ in range(NC)]
                          + [pltpu.VMEM((KG, Bc, H), jnp.float32) for _ in range(NC)],
        ),
        compiler_params=pltpu.CompilerParams(
            # batch blocks are independent ("parallel"); the time axis carries
            # the hidden state in VMEM scratch and must stay serial.
            dimension_semantics=("parallel", "arbitrary"),
            vmem_limit_bytes=vlim_gru,
        ),
    )(h0, gi3, *gru_weights)

    out3 = heads[:, :B, :]
    mu = out3[..., :A]
    sigma = out3[..., A:2 * A]
    critic = out3[..., 2 * A:2 * A + 1]
    return mu, sigma, critic


# ---------------------------------------------------------------------------
# Deterministic parameter init (synthetic; matches the module's shapes)
# ---------------------------------------------------------------------------
def init_params(key, num_inputs, hidden_size, gru_hidden, actor_size, num_actions):
    def dense(key, fan_in, fan_out):
        k1, k2 = jax.random.split(key)
        bound = 1.0 / float(fan_in) ** 0.5
        w = jax.random.uniform(k1, (fan_in, fan_out), jnp.float32, -bound, bound)
        b = jax.random.uniform(k2, (1, fan_out), jnp.float32, -bound, bound)
        return w, b

    keys = jax.random.split(key, 12)
    prm = {}
    prm["w_pic"], prm["b_pic"] = dense(keys[0], 512, 100)
    prm["w_lin"], prm["b_lin"] = dense(keys[1], num_inputs, hidden_size[0])
    prm["w_h1"], prm["b_h1"] = dense(keys[2], hidden_size[0], hidden_size[1])
    # catlinear: Linear(hidden_size[-1] + 100, 200), split into x-part / p-part rows
    prm["w_cat_x"], prm["b_cat"] = dense(keys[3], hidden_size[-1] + 100, 200)
    prm["w_cat_x"] = prm["w_cat_x"][: hidden_size[-1]]
    prm["w_cat_p"], _ = dense(keys[4], hidden_size[-1] + 100, 200)
    prm["w_cat_p"] = prm["w_cat_p"][:100]
    # GRU(200, gru_hidden): W_ih (200, 3H), W_hh (H, 3H), gate order r|z|n
    prm["w_ih"], prm["b_ih"] = dense(keys[5], 200, 3 * gru_hidden)
    prm["w_hh"], prm["b_hh"] = dense(keys[6], gru_hidden, 3 * gru_hidden)
    # heads (iso=False -> sigma = Linear(gru_hidden, num_actions))
    prm["w_act"], prm["b_act"] = dense(keys[7], gru_hidden, actor_size)
    prm["w_mu"], prm["b_mu"] = dense(keys[8], actor_size, num_actions)
    prm["w_sig"], prm["b_sig"] = dense(keys[9], gru_hidden, num_actions)
    prm["w_c1"], prm["b_c1"] = dense(keys[10], gru_hidden, 100)
    prm["w_c2"], prm["b_c2"] = dense(keys[11], 100, 1)
    return prm


# ---------------------------------------------------------------------------
# Pure-JAX reference for verification
# ---------------------------------------------------------------------------
def reference_forward(x, p, hx, prm):
    H = hx.shape[-1]
    pf = jax.nn.relu(p @ prm["w_pic"] + prm["b_pic"])
    x1 = jnp.tanh(x @ prm["w_lin"] + prm["b_lin"])
    x2 = jnp.tanh(x1 @ prm["w_h1"] + prm["b_h1"])
    feat = jnp.tanh(x2 @ prm["w_cat_x"] + pf @ prm["w_cat_p"] + prm["b_cat"])

    def step(h, f):
        gi = f @ prm["w_ih"] + prm["b_ih"]
        gh = h @ prm["w_hh"] + prm["b_hh"]
        r = jax.nn.sigmoid(gi[:, :H] + gh[:, :H])
        z = jax.nn.sigmoid(gi[:, H:2 * H] + gh[:, H:2 * H])
        n = jnp.tanh(gi[:, 2 * H:] + r * gh[:, 2 * H:])
        hn = (1.0 - z) * n + z * h
        return hn, hn

    _, hs = jax.lax.scan(step, hx[0], feat)
    actor = jnp.tanh(hs @ prm["w_act"] + prm["b_act"])
    mu = actor @ prm["w_mu"] + prm["b_mu"]
    sigma = hs @ prm["w_sig"] + prm["b_sig"]
    c_hid = jax.nn.relu(hs @ prm["w_c1"] + prm["b_c1"])
    critic = c_hid @ prm["w_c2"] + prm["b_c2"]
    return mu, sigma, critic


# ---------------------------------------------------------------------------
if __name__ == "__main__":
    # Small config consistent with the module's __init__
    T, B = 8, 2                       # seq len, batch
    num_inputs = 16
    hidden_size = [32, 32]            # one hidden layer: Linear(32, 32)
    gru_hidden = 32
    actor_size = 16
    num_actions = 4
    # iso=False -> sigma = sigma_linear(gru output) computed in-kernel

    key = jax.random.PRNGKey(0)
    kx, kp, kh, kw = jax.random.split(key, 4)

    x = jax.random.normal(kx, (T, B, num_inputs), jnp.float32)
    p = jax.random.normal(kp, (T, B, 512), jnp.float32)
    hx = jax.random.normal(kh, (1, B, gru_hidden), jnp.float32)
    params = init_params(kw, num_inputs, hidden_size, gru_hidden, actor_size, num_actions)

    mu, sigma, critic = acnet_cell_forward(x, p, hx, params)
    jax.block_until_ready((mu, sigma, critic))

    mu_r, sigma_r, critic_r = reference_forward(x, p, hx, params)
    assert mu.shape == (T, B, num_actions)
    assert sigma.shape == (T, B, num_actions)
    assert critic.shape == (T, B, 1)
    assert jnp.allclose(mu, mu_r, atol=1e-3, rtol=1e-3)
    assert jnp.allclose(sigma, sigma_r, atol=1e-3, rtol=1e-3)
    assert jnp.allclose(critic, critic_r, atol=1e-3, rtol=1e-3)

    print("KERNEL_OK")
</pallas_src>

<mosaic_0001>
module attributes {stable_mosaic.version = 11 : i64} {
  func.func @pre_kernel(%arg0: i32, %arg1: memref<64x16xf32, #tpu.memory_space<vmem>>, %arg2: memref<64x512xf32, #tpu.memory_space<vmem>>, %arg3: memref<512x100xf32, #tpu.memory_space<vmem>>, %arg4: memref<1x100xf32, #tpu.memory_space<vmem>>, %arg5: memref<16x32xf32, #tpu.memory_space<vmem>>, %arg6: memref<1x32xf32, #tpu.memory_space<vmem>>, %arg7: memref<32x32xf32, #tpu.memory_space<vmem>>, %arg8: memref<1x32xf32, #tpu.memory_space<vmem>>, %arg9: memref<32x200xf32, #tpu.memory_space<vmem>>, %arg10: memref<100x200xf32, #tpu.memory_space<vmem>>, %arg11: memref<1x200xf32, #tpu.memory_space<vmem>>, %arg12: memref<200x128xf32, #tpu.memory_space<vmem>>, %arg13: memref<1x128xf32, #tpu.memory_space<vmem>>, %arg14: memref<64x128xf32, #tpu.memory_space<vmem>>) attributes {dimension_semantics = [#tpu.dimension_semantics<parallel>], iteration_bounds = array<i64: 1>, scalar_prefetch = 0 : i64, scratch_operands = 0 : i64, tpu.core_type = #tpu.core_type<tc>, window_params = [{transform_indices = @transform_0, window_bounds = array<i64: 64, 16>}, {transform_indices = @transform_1, window_bounds = array<i64: 64, 512>}, {pipeline_mode = #tpu.pipeline_mode<synchronous>, transform_indices = @transform_2, window_bounds = array<i64: 512, 100>}, {pipeline_mode = #tpu.pipeline_mode<synchronous>, transform_indices = @transform_3, window_bounds = array<i64: 1, 100>}, {pipeline_mode = #tpu.pipeline_mode<synchronous>, transform_indices = @transform_4, window_bounds = array<i64: 16, 32>}, {pipeline_mode = #tpu.pipeline_mode<synchronous>, transform_indices = @transform_5, window_bounds = array<i64: 1, 32>}, {pipeline_mode = #tpu.pipeline_mode<synchronous>, transform_indices = @transform_6, window_bounds = array<i64: 32, 32>}, {pipeline_mode = #tpu.pipeline_mode<synchronous>, transform_indices = @transform_7, window_bounds = array<i64: 1, 32>}, {pipeline_mode = #tpu.pipeline_mode<synchronous>, transform_indices = @transform_8, window_bounds = array<i64: 32, 200>}, {pipeline_mode = #tpu.pipeline_mode<synchronous>, transform_indices = @transform_9, window_bounds = array<i64: 100, 200>}, {pipeline_mode = #tpu.pipeline_mode<synchronous>, transform_indices = @transform_10, window_bounds = array<i64: 1, 200>}, {pipeline_mode = #tpu.pipeline_mode<synchronous>, transform_indices = @transform_11, window_bounds = array<i64: 200, 128>}, {pipeline_mode = #tpu.pipeline_mode<synchronous>, transform_indices = @transform_12, window_bounds = array<i64: 1, 128>}, {transform_indices = @transform_13, window_bounds = array<i64: 64, 128>}]} {
    %c0 = arith.constant 0 : index
    %c0_0 = arith.constant 0 : index
    %0 = vector.load %arg2[%c0, %c0_0] : memref<64x512xf32, #tpu.memory_space<vmem>>, vector<64x512xf32>
    %c0_1 = arith.constant 0 : index
    %c0_2 = arith.constant 0 : index
    %1 = vector.load %arg3[%c0_1, %c0_2] : memref<512x100xf32, #tpu.memory_space<vmem>>, vector<512x100xf32>
    %cst = arith.constant dense<0.000000e+00> : vector<64x100xf32>
    %2 = tpu.matmul %0, %1, %cst {dimension_numbers = #tpu.dot_dimension_numbers<[1], [0], [0], [1], [0, 0, 1, 1], [], []>} : vector<64x512xf32>, vector<512x100xf32>, vector<64x100xf32> -> vector<64x100xf32>
    %c0_3 = arith.constant 0 : index
    %c0_4 = arith.constant 0 : index
    %3 = vector.load %arg4[%c0_3, %c0_4] : memref<1x100xf32, #tpu.memory_space<vmem>>, vector<1x100xf32>
    %4 = vector.broadcast %3 : vector<1x100xf32> to vector<64x100xf32>
    %5 = arith.addf %2, %4 : vector<64x100xf32>
    %cst_5 = arith.constant 0.000000e+00 : f32
    %6 = vector.broadcast %cst_5 : f32 to vector<64x100xf32>
    %7 = arith.maximumf %5, %6 : vector<64x100xf32>
    %c0_6 = arith.constant 0 : index
    %c0_7 = arith.constant 0 : index
    %8 = vector.load %arg1[%c0_6, %c0_7] : memref<64x16xf32, #tpu.memory_space<vmem>>, vector<64x16xf32>
    %c0_8 = arith.constant 0 : index
    %c0_9 = arith.constant 0 : index
    %9 = vector.load %arg5[%c0_8, %c0_9] : memref<16x32xf32, #tpu.memory_space<vmem>>, vector<16x32xf32>
    %cst_10 = arith.constant dense<0.000000e+00> : vector<64x32xf32>
    %10 = tpu.matmul %8, %9, %cst_10 {dimension_numbers = #tpu.dot_dimension_numbers<[1], [0], [0], [1], [0, 0, 1, 1], [], []>} : vector<64x16xf32>, vector<16x32xf32>, vector<64x32xf32> -> vector<64x32xf32>
    %c0_11 = arith.constant 0 : index
    %c0_12 = arith.constant 0 : index
    %11 = vector.load %arg6[%c0_11, %c0_12] : memref<1x32xf32, #tpu.memory_space<vmem>>, vector<1x32xf32>
    %12 = vector.broadcast %11 : vector<1x32xf32> to vector<64x32xf32>
    %13 = arith.addf %10, %12 : vector<64x32xf32>
    %14 = math.tanh %13 : vector<64x32xf32>
    %c0_13 = arith.constant 0 : index
    %c0_14 = arith.constant 0 : index
    %15 = vector.load %arg7[%c0_13, %c0_14] : memref<32x32xf32, #tpu.memory_space<vmem>>, vector<32x32xf32>
    %cst_15 = arith.constant dense<0.000000e+00> : vector<64x32xf32>
    %16 = tpu.matmul %14, %15, %cst_15 {dimension_numbers = #tpu.dot_dimension_numbers<[1], [0], [0], [1], [0, 0, 1, 1], [], []>} : vector<64x32xf32>, vector<32x32xf32>, vector<64x32xf32> -> vector<64x32xf32>
    %c0_16 = arith.constant 0 : index
    %c0_17 = arith.constant 0 : index
    %17 = vector.load %arg8[%c0_16, %c0_17] : memref<1x32xf32, #tpu.memory_space<vmem>>, vector<1x32xf32>
    %18 = vector.broadcast %17 : vector<1x32xf32> to vector<64x32xf32>
    %19 = arith.addf %16, %18 : vector<64x32xf32>
    %20 = math.tanh %19 : vector<64x32xf32>
    %c0_18 = arith.constant 0 : index
    %c0_19 = arith.constant 0 : index
    %21 = vector.load %arg9[%c0_18, %c0_19] : memref<32x200xf32, #tpu.memory_space<vmem>>, vector<32x200xf32>
    %cst_20 = arith.constant dense<0.000000e+00> : vector<64x200xf32>
    %22 = tpu.matmul %20, %21, %cst_20 {dimension_numbers = #tpu.dot_dimension_numbers<[1], [0], [0], [1], [0, 0, 1, 1], [], []>} : vector<64x32xf32>, vector<32x200xf32>, vector<64x200xf32> -> vector<64x200xf32>
    %c0_21 = arith.constant 0 : index
    %c0_22 = arith.constant 0 : index
    %23 = vector.load %arg10[%c0_21, %c0_22] : memref<100x200xf32, #tpu.memory_space<vmem>>, vector<100x200xf32>
    %cst_23 = arith.constant dense<0.000000e+00> : vector<64x200xf32>
    %24 = tpu.matmul %7, %23, %cst_23 {dimension_numbers = #tpu.dot_dimension_numbers<[1], [0], [0], [1], [0, 0, 1, 1], [], []>} : vector<64x100xf32>, vector<100x200xf32>, vector<64x200xf32> -> vector<64x200xf32>
    %25 = arith.addf %22, %24 : vector<64x200xf32>
    %c0_24 = arith.constant 0 : index
    %c0_25 = arith.constant 0 : index
    %26 = vector.load %arg11[%c0_24, %c0_25] : memref<1x200xf32, #tpu.memory_space<vmem>>, vector<1x200xf32>
    %27 = vector.broadcast %26 : vector<1x200xf32> to vector<64x200xf32>
    %28 = arith.addf %25, %27 : vector<64x200xf32>
    %29 = math.tanh %28 : vector<64x200xf32>
    %c0_26 = arith.constant 0 : index
    %c0_27 = arith.constant 0 : index
    %30 = vector.load %arg12[%c0_26, %c0_27] : memref<200x128xf32, #tpu.memory_space<vmem>>, vector<200x128xf32>
    %cst_28 = arith.constant dense<0.000000e+00> : vector<64x128xf32>
    %31 = tpu.matmul %29, %30, %cst_28 {dimension_numbers = #tpu.dot_dimension_numbers<[1], [0], [0], [1], [0, 0, 1, 1], [], []>} : vector<64x200xf32>, vector<200x128xf32>, vector<64x128xf32> -> vector<64x128xf32>
    %c0_29 = arith.constant 0 : index
    %c0_30 = arith.constant 0 : index
    %32 = vector.load %arg13[%c0_29, %c0_30] : memref<1x128xf32, #tpu.memory_space<vmem>>, vector<1x128xf32>
    %33 = vector.broadcast %32 : vector<1x128xf32> to vector<64x128xf32>
    %34 = arith.addf %31, %33 : vector<64x128xf32>
    %c0_31 = arith.constant 0 : index
    %c0_32 = arith.constant 0 : index
    %35 = vector.load %arg14[%c0_31, %c0_32] : memref<64x128xf32, #tpu.memory_space<vmem>>, vector<64x128xf32>
    tpu.vector_store %arg14[%c0_31, %c0_32], %34 {strides = array<i32>} : memref<64x128xf32, #tpu.memory_space<vmem>>, vector<64x128xf32>,
    return
  }
  func.func @transform_0(%arg0: i32) -> (i32, i32) {
    %c0_i32 = arith.constant 0 : i32
    %c0_i32_0 = arith.constant 0 : i32
    return %arg0, %c0_i32 : i32, i32
  }
  func.func @transform_1(%arg0: i32) -> (i32, i32) {
    %c0_i32 = arith.constant 0 : i32
    %c0_i32_0 = arith.constant 0 : i32
    return %arg0, %c0_i32 : i32, i32
  }
  func.func @transform_2(%arg0: i32) -> (i32, i32) {
    %c0_i32 = arith.constant 0 : i32
    %c0_i32_0 = arith.constant 0 : i32
    %c0_i32_1 = arith.constant 0 : i32
    return %c0_i32, %c0_i32_0 : i32, i32
  }
  func.func @transform_3(%arg0: i32) -> (i32, i32) {
    %c0_i32 = arith.constant 0 : i32
    %c0_i32_0 = arith.constant 0 : i32
    %c0_i32_1 = arith.constant 0 : i32
    return %c0_i32, %c0_i32_0 : i32, i32
  }
  func.func @transform_4(%arg0: i32) -> (i32, i32) {
    %c0_i32 = arith.constant 0 : i32
    %c0_i32_0 = arith.constant 0 : i32
    %c0_i32_1 = arith.constant 0 : i32
    return %c0_i32, %c0_i32_0 : i32, i32
  }
  func.func @transform_5(%arg0: i32) -> (i32, i32) {
    %c0_i32 = arith.constant 0 : i32
    %c0_i32_0 = arith.constant 0 : i32
    %c0_i32_1 = arith.constant 0 : i32
    return %c0_i32, %c0_i32_0 : i32, i32
  }
  func.func @transform_6(%arg0: i32) -> (i32, i32) {
    %c0_i32 = arith.constant 0 : i32
    %c0_i32_0 = arith.constant 0 : i32
    %c0_i32_1 = arith.constant 0 : i32
    return %c0_i32, %c0_i32_0 : i32, i32
  }
  func.func @transform_7(%arg0: i32) -> (i32, i32) {
    %c0_i32 = arith.constant 0 : i32
    %c0_i32_0 = arith.constant 0 : i32
    %c0_i32_1 = arith.constant 0 : i32
    return %c0_i32, %c0_i32_0 : i32, i32
  }
  func.func @transform_8(%arg0: i32) -> (i32, i32) {
    %c0_i32 = arith.constant 0 : i32
    %c0_i32_0 = arith.constant 0 : i32
    %c0_i32_1 = arith.constant 0 : i32
    return %c0_i32, %c0_i32_0 : i32, i32
  }
  func.func @transform_9(%arg0: i32) -> (i32, i32) {
    %c0_i32 = arith.constant 0 : i32
    %c0_i32_0 = arith.constant 0 : i32
    %c0_i32_1 = arith.constant 0 : i32
    return %c0_i32, %c0_i32_0 : i32, i32
  }
  func.func @transform_10(%arg0: i32) -> (i32, i32) {
    %c0_i32 = arith.constant 0 : i32
    %c0_i32_0 = arith.constant 0 : i32
    %c0_i32_1 = arith.constant 0 : i32
    return %c0_i32, %c0_i32_0 : i32, i32
  }
  func.func @transform_11(%arg0: i32) -> (i32, i32) {
    %c0_i32 = arith.constant 0 : i32
    %c0_i32_0 = arith.constant 0 : i32
    %c0_i32_1 = arith.constant 0 : i32
    return %c0_i32, %c0_i32_0 : i32, i32
  }
  func.func @transform_12(%arg0: i32) -> (i32, i32) {
    %c0_i32 = arith.constant 0 : i32
    %c0_i32_0 = arith.constant 0 : i32
    %c0_i32_1 = arith.constant 0 : i32
    return %c0_i32, %c0_i32_0 : i32, i32
  }
  func.func @transform_13(%arg0: i32) -> (i32, i32) {
    %c0_i32 = arith.constant 0 : i32
    %c0_i32_0 = arith.constant 0 : i32
    return %arg0, %c0_i32 : i32, i32
  }
}

</mosaic_0001>

<bundles_post_ra>
// kernel: tpu_custom_call.1
= control target key start
LH: loop header
LB: loop body
LE: loop exit
PB: predicated region body
PF: predicated region fallthrough
CT: control target
= control target key end

     0   :  { %s1790_s0 = inlined_call_operand.vmem [shape: f32[64,16], index: 0, kind: input, shape index: {}]   ;;  %s1791_s1 = inlined_call_operand.vmem [shape: f32[64,512], index: 1, kind: input, shape index: {}]   ;;  %s1792_s2 = inlined_call_operand.vmem [shape: f32[512,100], index: 2, kind: input, shape index: {}]   ;;  %s1793_s3 = inlined_call_operand.vmem [shape: f32[1,100], index: 3, kind: input, shape index: {}]   ;;  %s1794_s4 = inlined_call_operand.vmem [shape: f32[16,32], index: 4, kind: input, shape index: {}]   ;;  %s1795_s5 = inlined_call_operand.vmem [shape: f32[1,32], index: 5, kind: input, shape index: {}]   ;;  %s1796_s6 = inlined_call_operand.vmem [shape: f32[32,32], index: 6, kind: input, shape index: {}]   ;;  %s1797_s7 = inlined_call_operand.vmem [shape: f32[1,32], index: 7, kind: input, shape index: {}]   ;;  %s1798_s8 = inlined_call_operand.vmem [shape: f32[32,200], index: 8, kind: input, shape index: {}]   ;;  %s1799_s9 = inlined_call_operand.vmem [shape: f32[100,200], index: 9, kind: input, shape index: {}]   ;;  %s1800_s10 = inlined_call_operand.vmem [shape: f32[1,200], index: 10, kind: input, shape index: {}]   ;;  %s1801_s11 = inlined_call_operand.vmem [shape: f32[200,128], index: 11, kind: input, shape index: {}]   ;;  %s1802_s12 = inlined_call_operand.vmem [shape: f32[1,128], index: 12, kind: input, shape index: {}]   ;;  %s1803_s13 = inlined_call_operand.hbm [shape: f32[64,128], index: 13, kind: output, shape index: {}]  }
   0x1   :  { %v92_v0 = vld [vmem:[%s1792_s2 + $0x78] sm:$0xff]  ;;  %v91_v2 = vld [vmem:[%s1792_s2 + $0x70] sm:$0xff]  ;;  %v90_v6 = vld [vmem:[%s1792_s2 + $0x68] sm:$0xff] }
   0x2   :  { %v124_v1 = vld [vmem:[%s1792_s2 + $0x178] sm:$0xff]  ;;  %145 = vmatpush.msra.mxu0 %v92_v0  ;;  %v123_v4 = vld [vmem:[%s1792_s2 + $0x170] sm:$0xff]  ;;  %v122_v8 = vld [vmem:[%s1792_s2 + $0x168] sm:$0xff] }
   0x3   :  { %227 = vmatpush.msra.mxu2 %v124_v1  ;;  %v108_v3 = vld [vmem:[%s1792_s2 + $0xf8] sm:$0xff]  ;;  %v107_v7 = vld [vmem:[%s1792_s2 + $0xf0] sm:$0xff]  ;;  %v106_v10 = vld [vmem:[%s1792_s2 + $0xe8] sm:$0xff] }
   0x4   :  { %v140_v5 = vld [vmem:[%s1792_s2 + $0x1f8] sm:$0xff]  ;;  %186 = vmatpush.msra.mxu1 %v108_v3  ;;  %146 = vmatpush.msra.mxu0 %v91_v2  ;;  %v139_v9 = vld [vmem:[%s1792_s2 + $0x1f0] sm:$0xff]  ;;  %v89_v11 = vld [vmem:[%s1792_s2 + $0x60] sm:$0xff] }
   0x5   :  { %268 = vmatpush.msra.mxu3 %v140_v5  ;;  %228 = vmatpush.msra.mxu2 %v123_v4  ;;  %v121_v12 = vld [vmem:[%s1792_s2 + $0x160] sm:$0xff]  ;;  %v138_v13 = vld [vmem:[%s1792_s2 + $0x1e8] sm:$0xff]  ;;  %v88_v16 = vld [vmem:[%s1792_s2 + $0x58] sm:$0xff] }
   0x6   :  { %187 = vmatpush.msra.mxu1 %v107_v7  ;;  %147 = vmatpush.msra.mxu0 %v90_v6  ;;  %v105_v14 = vld [vmem:[%s1792_s2 + $0xe0] sm:$0xff]  ;;  %v120_v17 = vld [vmem:[%s1792_s2 + $0x158] sm:$0xff]  ;;  %v87_v20 = vld [vmem:[%s1792_s2 + $0x50] sm:$0xff] }
   0x7   :  { %269 = vmatpush.msra.mxu3 %v139_v9  ;;  %229 = vmatpush.msra.mxu2 %v122_v8  ;;  %v137_v15 = vld [vmem:[%s1792_s2 + $0x1e0] sm:$0xff]  ;;  %v104_v18 = vld [vmem:[%s1792_s2 + $0xd8] sm:$0xff]  ;;  %v119_v21 = vld [vmem:[%s1792_s2 + $0x150] sm:$0xff] }
   0x8   :  { %188 = vmatpush.msra.mxu1 %v106_v10  ;;  %148 = vmatpush.msra.mxu0 %v89_v11  ;;  %v136_v19 = vld [vmem:[%s1792_s2 + $0x1d8] sm:$0xff]  ;;  %v103_v22 = vld [vmem:[%s1792_s2 + $0xd0] sm:$0xff]  ;;  %v86_v24 = vld [vmem:[%s1792_s2 + $0x48] sm:$0xff] }
   0x9   :  { %270 = vmatpush.msra.mxu3 %v138_v13  ;;  %230 = vmatpush.msra.mxu2 %v121_v12  ;;  %v135_v23 = vld [vmem:[%s1792_s2 + $0x1d0] sm:$0xff]  ;;  %v118_v25 = vld [vmem:[%s1792_s2 + $0x148] sm:$0xff]  ;;  %v85_v28 = vld [vmem:[%s1792_s2 + $0x40] sm:$0xff] }
   0xa   :  { %189 = vmatpush.msra.mxu1 %v105_v14  ;;  %149 = vmatpush.msra.mxu0 %v88_v16  ;;  %v102_v26 = vld [vmem:[%s1792_s2 + $0xc8] sm:$0xff]  ;;  %v117_v29 = vld [vmem:[%s1792_s2 + $0x140] sm:$0xff]  ;;  %v84_v32 = vld [vmem:[%s1792_s2 + $0x38] sm:$0xff] }
   0xb   :  { %271 = vmatpush.msra.mxu3 %v137_v15  ;;  %231 = vmatpush.msra.mxu2 %v120_v17  ;;  %v134_v27 = vld [vmem:[%s1792_s2 + $0x1c8] sm:$0xff]  ;;  %v101_v30 = vld [vmem:[%s1792_s2 + $0xc0] sm:$0xff]  ;;  %v116_v33 = vld [vmem:[%s1792_s2 + $0x138] sm:$0xff] }
   0xc   :  { %190 = vmatpush.msra.mxu1 %v104_v18  ;;  %150 = vmatpush.msra.mxu0 %v87_v20  ;;  %v133_v31 = vld [vmem:[%s1792_s2 + $0x1c0] sm:$0xff]  ;;  %v100_v34 = vld [vmem:[%s1792_s2 + $0xb8] sm:$0xff]  ;;  %v83_v36 = vld [vmem:[%s1792_s2 + $0x30] sm:$0xff] }
   0xd   :  { %272 = vmatpush.msra.mxu3 %v136_v19  ;;  %232 = vmatpush.msra.mxu2 %v119_v21  ;;  %v132_v35 = vld [vmem:[%s1792_s2 + $0x1b8] sm:$0xff]  ;;  %v115_v37 = vld [vmem:[%s1792_s2 + $0x130] sm:$0xff]  ;;  %v82_v40 = vld [vmem:[%s1792_s2 + $0x28] sm:$0xff] }
   0xe   :  { %191 = vmatpush.msra.mxu1 %v103_v22  ;;  %151 = vmatpush.msra.mxu0 %v86_v24  ;;  %v99_v38 = vld [vmem:[%s1792_s2 + $0xb0] sm:$0xff]  ;;  %v114_v41 = vld [vmem:[%s1792_s2 + $0x128] sm:$0xff]  ;;  %v81_v44 = vld [vmem:[%s1792_s2 + $0x20] sm:$0xff] }
   0xf   :  { %273 = vmatpush.msra.mxu3 %v135_v23  ;;  %233 = vmatpush.msra.mxu2 %v118_v25  ;;  %v131_v39 = vld [vmem:[%s1792_s2 + $0x1b0] sm:$0xff]  ;;  %v98_v42 = vld [vmem:[%s1792_s2 + $0xa8] sm:$0xff]  ;;  %v113_v45 = vld [vmem:[%s1792_s2 + $0x120] sm:$0xff] }
  0x10   :  { %192 = vmatpush.msra.mxu1 %v102_v26  ;;  %152 = vmatpush.msra.mxu0 %v85_v28  ;;  %v130_v43 = vld [vmem:[%s1792_s2 + $0x1a8] sm:$0xff]  ;;  %v97_v46 = vld [vmem:[%s1792_s2 + $0xa0] sm:$0xff]  ;;  %v80_v48 = vld [vmem:[%s1792_s2 + $0x18] sm:$0xff] }
  0x11   :  { %274 = vmatpush.msra.mxu3 %v134_v27  ;;  %234 = vmatpush.msra.mxu2 %v117_v29  ;;  %v129_v47 = vld [vmem:[%s1792_s2 + $0x1a0] sm:$0xff]  ;;  %v112_v49 = vld [vmem:[%s1792_s2 + $0x118] sm:$0xff]  ;;  %v79_v52 = vld [vmem:[%s1792_s2 + $0x10] sm:$0xff] }
  0x12   :  { %193 = vmatpush.msra.mxu1 %v101_v30  ;;  %153 = vmatpush.msra.mxu0 %v84_v32  ;;  %v96_v50 = vld [vmem:[%s1792_s2 + $0x98] sm:$0xff]  ;;  %v111_v53 = vld [vmem:[%s1792_s2 + $0x110] sm:$0xff]  ;;  %v78_v54 = vld [vmem:[%s1792_s2 + $0x8] sm:$0xff] }
  0x13   :  { %275 = vmatpush.msra.mxu3 %v133_v31  ;;  %235 = vmatpush.msra.mxu2 %v116_v33  ;;  %v128_v51 = vld [vmem:[%s1792_s2 + $0x198] sm:$0xff]  ;;  %v95_v55 = vld [vmem:[%s1792_s2 + $0x90] sm:$0xff]  ;;  %v110_v56 = vld [vmem:[%s1792_s2 + $0x108] sm:$0xff] }
  0x14   :  { %194 = vmatpush.msra.mxu1 %v100_v34  ;;  %154 = vmatpush.msra.mxu0 %v83_v36  ;;  %v127_v57 = vld [vmem:[%s1792_s2 + $0x190] sm:$0xff]  ;;  %v77_v58 = vld [vmem:[%s1792_s2] sm:$0xff]  ;;  %v94_v59 = vld [vmem:[%s1792_s2 + $0x88] sm:$0xff] }
  0x15   :  { %276 = vmatpush.msra.mxu3 %v132_v35  ;;  %236 = vmatpush.msra.mxu2 %v115_v37  ;;  %v109_v60 = vld [vmem:[%s1792_s2 + $0x100] sm:$0xff]  ;;  %v126_v61 = vld [vmem:[%s1792_s2 + $0x188] sm:$0xff] }
  0x16   :  { %195 = vmatpush.msra.mxu1 %v99_v38  ;;  %155 = vmatpush.msra.mxu0 %v82_v40 }
  0x17   :  { %277 = vmatpush.msra.mxu3 %v131_v39  ;;  %237 = vmatpush.msra.mxu2 %v114_v41 }
  0x18   :  { %196 = vmatpush.msra.mxu1 %v98_v42  ;;  %156 = vmatpush.msra.mxu0 %v81_v44 }
  0x19   :  { %278 = vmatpush.msra.mxu3 %v130_v43  ;;  %238 = vmatpush.msra.mxu2 %v113_v45 }
  0x1a   :  { %197 = vmatpush.msra.mxu1 %v97_v46  ;;  %157 = vmatpush.msra.mxu0 %v80_v48 }
  0x1b   :  { %279 = vmatpush.msra.mxu3 %v129_v47  ;;  %239 = vmatpush.msra.mxu2 %v112_v49 }
  0x1c   :  { %198 = vmatpush.msra.mxu1 %v96_v50  ;;  %158 = vmatpush.msra.mxu0 %v79_v52 }
  0x1d   :  { %280 = vmatpush.msra.mxu3 %v128_v51  ;;  %240 = vmatpush.msra.mxu2 %v111_v53 }
  0x1e   :  { %199 = vmatpush.msra.mxu1 %v95_v55 }
  0x1f   :  { %281 = vmatpush.msra.mxu3 %v127_v57 }
  0x20   :  { %18 = vsyncpa [#allocation3], 0  ;;  %159 = vmatpush.msra.mxu0 %v78_v54  ;;  %241 = vmatpush.msra.mxu2 %v110_v56  ;;  %v45_v62 = vld [vmem:[%s1791_s1] sm:$0xff]  ;;  %v47_v63 = vld [vmem:[%s1791_s1 + $0x10] sm:$0xff]  ;;  %vm331_vm0 = vcmask 130048   ;;  %vm546_vm1 = vcmask 1043456  }
  0x21   :  { %200 = vmatpush.msra.mxu1 %v94_v59  ;;  %282 = vmatpush.msra.mxu3 %v126_v61  ;;  %v326_v0 = vld [vmem:[%s1794_s4 + $0x8] sm:$0xff]  ;;  %v93_v1 = vld [vmem:[%s1792_s2 + $0x80] sm:$0xff]  ;;  %v48_v4 = vld [vmem:[%s1791_s1 + $0x18] sm:$0xff]  ;;  %vm521_vm2 = vcmask 818176   ;;  %vm413_vm3 = vcmask 261120   ;;  %vm808_vm4 = vcmask 588800  }
  0x22   :  { %160 = vmatpush.msra.mxu0 %v77_v58  ;;  %242 = vmatpush.msra.mxu2 %v109_v60  ;;  %v125_v2 = vld [vmem:[%s1792_s2 + $0x180] sm:$0xff]  ;;  %v46_v3 = vld [vmem:[%s1791_s1 + $0x8] sm:$0xff]  ;;  %v51_v7 = vld [vmem:[%s1791_s1 + $0x30] sm:$0xff]  ;;  %s1097_s20 = smov 128  }
  0x23   :  { %161 = vmatmul.f32.vlgmr.msra.gmra.mxu0 %v45_v62  ;;  %243 = vmatmul.f32.vlgmr.msra.gmra.mxu2 %v47_v63  ;;  %v325_v5 = vld [vmem:[%s1794_s4] sm:$0xff]  ;;  %v50_v8 = vld [vmem:[%s1791_s1 + $0x28] sm:$0xff]  ;;  %v52_v9 = vld [vmem:[%s1791_s1 + $0x38] sm:$0xff] }
  0x24   :  { %370 = vmatpush.msrb.mxu0 %v326_v0  ;;  %201 = vmatpush.msra.mxu1 %v93_v1  ;;  %v49_v6 = vld [vmem:[%s1791_s1 + $0x20] sm:$0xff]  ;;  %v55_v11 = vld [vmem:[%s1791_s1 + $0x50] sm:$0xff]  ;;  %v54_v12 = vld [vmem:[%s1791_s1 + $0x48] sm:$0xff] }
  0x25   :  { %283 = vmatpush.msra.mxu3 %v125_v2  ;;  %202 = vmatmul.f32.vlgmr.msra.gmra.mxu1 %v46_v3  ;;  %v53_v10 = vld [vmem:[%s1791_s1 + $0x40] sm:$0xff]  ;;  %v56_v13 = vld [vmem:[%s1791_s1 + $0x58] sm:$0xff]  ;;  %v59_v15 = vld [vmem:[%s1791_s1 + $0x70] sm:$0xff] }
  0x26   :  { %284 = vmatmul.f32.vlgmr.msra.gmra.mxu3 %v48_v4  ;;  %371 = vmatpush.msrb.mxu0 %v325_v5  ;;  %v57_v14 = vld [vmem:[%s1791_s1 + $0x60] sm:$0xff]  ;;  %v58_v16 = vld [vmem:[%s1791_s1 + $0x68] sm:$0xff]  ;;  %v60_v17 = vld [vmem:[%s1791_s1 + $0x78] sm:$0xff] }
  0x27   :  { %v61_v18 = vld [vmem:[%s1791_s1 + $0x80] sm:$0xff]  ;;  %v63_v19 = vld [vmem:[%s1791_s1 + $0x90] sm:$0xff]  ;;  %v62_v20 = vld [vmem:[%s1791_s1 + $0x88] sm:$0xff] }
  0x28   :  { %v64_v21 = vld [vmem:[%s1791_s1 + $0x98] sm:$0xff]  ;;  %v65_v22 = vld [vmem:[%s1791_s1 + $0xa0] sm:$0xff]  ;;  %v67_v23 = vld [vmem:[%s1791_s1 + $0xb0] sm:$0xff] }
  0x29   :  { %v66_v24 = vld [vmem:[%s1791_s1 + $0xa8] sm:$0xff]  ;;  %v68_v25 = vld [vmem:[%s1791_s1 + $0xb8] sm:$0xff]  ;;  %v69_v26 = vld [vmem:[%s1791_s1 + $0xc0] sm:$0xff] }
  0x2a   :  { %v71_v27 = vld [vmem:[%s1791_s1 + $0xd0] sm:$0xff]  ;;  %v70_v28 = vld [vmem:[%s1791_s1 + $0xc8] sm:$0xff]  ;;  %v72_v29 = vld [vmem:[%s1791_s1 + $0xd8] sm:$0xff] }
  0x2b   :  { %164 = vmatmul.f32.gmra.mxu0 %v49_v6  ;;  %246 = vmatmul.f32.gmra.mxu2 %v51_v7  ;;  %v73_v30 = vld [vmem:[%s1791_s1 + $0xe0] sm:$0xff]  ;;  %v75_v31 = vld [vmem:[%s1791_s1 + $0xf0] sm:$0xff]  ;;  %v74_v32 = vld [vmem:[%s1791_s1 + $0xe8] sm:$0xff] }
  0x2c   :  { %v76_v33 = vld [vmem:[%s1791_s1 + $0xf8] sm:$0xff]  ;;  %v317_v34 = vld [vmem:[%s1790_s0] sm:$0xff]  ;;  %v318_v35 = vld [vmem:[%s1790_s0 + $0x8] sm:$0xff] }
  0x2d   :  { %205 = vmatmul.f32.gmra.mxu1 %v50_v8  ;;  %v319_v36 = vld [vmem:[%s1790_s0 + $0x10] sm:$0xff]  ;;  %v519_v37 = vld [vmem:[%s1799_s9 + $0xc0] sm:$0xf]  ;;  %v520_v38 = vld [vmem:[%s1799_s9 + $0xc8] sm:$0xf] }
  0x2e   :  { %287 = vmatmul.f32.gmra.mxu3 %v52_v9  ;;  %v517_v39 = vld [vmem:[%s1799_s9 + $0xb0] sm:$0xff]  ;;  %957 = vmatpush.msk.msrb.mxu2 %vm546_vm1, %v519_v37  ;;  %v518_v40 = vld [vmem:[%s1799_s9 + $0xb8] sm:$0xff]  ;;  %v515_v41 = vld [vmem:[%s1799_s9 + $0xa0] sm:$0xff] }
  0x2f   :  { %966 = vmatpush.msk.msrb.mxu3 %vm546_vm1, %v520_v38  ;;  %v516_v42 = vld [vmem:[%s1799_s9 + $0xa8] sm:$0xff]  ;;  %v513_v43 = vld [vmem:[%s1799_s9 + $0x90] sm:$0xff]  ;;  %v514_v44 = vld [vmem:[%s1799_s9 + $0x98] sm:$0xff] }
  0x30   :  { %557 = vmatpush.msrb.mxu2 %v517_v39  ;;  %v320_v45 = vld [vmem:[%s1790_s0 + $0x18] sm:$0xff]  ;;  %v511_v46 = vld [vmem:[%s1799_s9 + $0x80] sm:$0xff]  ;;  %v512_v47 = vld [vmem:[%s1799_s9 + $0x88] sm:$0xff] }
  0x31   :  { %598 = vmatpush.msrb.mxu3 %v518_v40  ;;  %v509_v48 = vld [vmem:[%s1799_s9 + $0x70] sm:$0xff]  ;;  %v510_v49 = vld [vmem:[%s1799_s9 + $0x78] sm:$0xff]  ;;  %v321_v50 = vld [vmem:[%s1790_s0 + $0x20] sm:$0xff] }
  0x32   :  { %558 = vmatpush.msrb.mxu2 %v515_v41  ;;  %v507_v51 = vld [vmem:[%s1799_s9 + $0x60] sm:$0xff]  ;;  %v508_v52 = vld [vmem:[%s1799_s9 + $0x68] sm:$0xff]  ;;  %v505_v53 = vld [vmem:[%s1799_s9 + $0x50] sm:$0xff] }
  0x33   :  { %167 = vmatmul.f32.gmra.mxu0 %v53_v10  ;;  %249 = vmatmul.f32.gmra.mxu2 %v55_v11  ;;  %v506_v54 = vld [vmem:[%s1799_s9 + $0x58] sm:$0xff]  ;;  %v503_v55 = vld [vmem:[%s1799_s9 + $0x40] sm:$0xff]  ;;  %v504_v56 = vld [vmem:[%s1799_s9 + $0x48] sm:$0xff] }
  0x34   :  { %599 = vmatpush.msrb.mxu3 %v516_v42  ;;  %559 = vmatpush.msrb.mxu2 %v513_v43  ;;  %v501_v57 = vld [vmem:[%s1799_s9 + $0x30] sm:$0xff]  ;;  %v502_v58 = vld [vmem:[%s1799_s9 + $0x38] sm:$0xff]  ;;  %v322_v59 = vld [vmem:[%s1790_s0 + $0x28] sm:$0xff] }
  0x35   :  { %208 = vmatmul.f32.gmra.mxu1 %v54_v12  ;;  %v499_v60 = vld [vmem:[%s1799_s9 + $0x20] sm:$0xff]  ;;  %v500_v61 = vld [vmem:[%s1799_s9 + $0x28] sm:$0xff]  ;;  %v497_v62 = vld [vmem:[%s1799_s9 + $0x10] sm:$0xff] }
  0x36   :  { %290 = vmatmul.f32.gmra.mxu3 %v56_v13  ;;  %560 = vmatpush.msrb.mxu2 %v511_v46  ;;  %v498_v63 = vld [vmem:[%s1799_s9 + $0x18] sm:$0xff]  ;;  %v495_v1 = vld [vmem:[%s1799_s9] sm:$0xff]  ;;  %v496_v2 = vld [vmem:[%s1799_s9 + $0x8] sm:$0xff] }
  0x37   :  { %600 = vmatpush.msrb.mxu3 %v514_v44  ;;  %v408_v0 = vld [vmem:[%s1796_s6 + $0x18] sm:$0xff]  ;;  %v323_v3 = vld [vmem:[%s1790_s0 + $0x30] sm:$0xff]  ;;  %v1582_v6 = vld [vmem:[%s1793_s3] ss:$0 sm:$0xff] }
  0x38   :  { %561 = vmatpush.msrb.mxu2 %v509_v48  ;;  %450 = vmatpush.msrb.mxu1 %v408_v0  ;;  %v324_v4 = vld [vmem:[%s1790_s0 + $0x38] sm:$0xff]  ;;  %v407_v5 = vld [vmem:[%s1796_s6 + $0x10] sm:$0xff]  ;;  %v405_v38 = vld [vmem:[%s1796_s6] sm:$0xff]  ;;  %s1098_s0 = smov 8  }
  0x39   :  { %601 = vmatpush.msrb.mxu3 %v512_v47 }
  0x3a   :  { %562 = vmatpush.msrb.mxu2 %v507_v51  ;;  %451 = vmatpush.msrb.mxu1 %v407_v5 }
  0x3b   :  { %170 = vmatmul.f32.gmra.mxu0 %v57_v14  ;;  %252 = vmatmul.f32.gmra.mxu2 %v59_v15 }
  0x3c   :  { %602 = vmatpush.msrb.mxu3 %v510_v49  ;;  %563 = vmatpush.msrb.mxu2 %v505_v53 }
  0x3d   :  { %211 = vmatmul.f32.gmra.mxu1 %v58_v16 }
  0x3e   :  { %293 = vmatmul.f32.gmra.mxu3 %v60_v17  ;;  %564 = vmatpush.msrb.mxu2 %v503_v55 }
  0x3f   :  { %603 = vmatpush.msrb.mxu3 %v508_v52 }
  0x40   :  { %565 = vmatpush.msrb.mxu2 %v501_v57 }
  0x41   :  { %604 = vmatpush.msrb.mxu3 %v506_v54 }
  0x42   :  { %566 = vmatpush.msrb.mxu2 %v499_v60 }
  0x43   :  { %173 = vmatmul.f32.gmra.mxu0 %v61_v18  ;;  %255 = vmatmul.f32.gmra.mxu2 %v63_v19  ;;  %v406_v19 = vld [vmem:[%s1796_s6 + $0x8] sm:$0xff] }
  0x44   :  { %605 = vmatpush.msrb.mxu3 %v504_v56  ;;  %567 = vmatpush.msrb.mxu2 %v497_v62 }
  0x45   :  { %214 = vmatmul.f32.gmra.mxu1 %v62_v20 }
  0x46   :  { %296 = vmatmul.f32.gmra.mxu3 %v64_v21  ;;  %568 = vmatpush.msrb.mxu2 %v495_v1 }
  0x47   :  { %606 = vmatpush.msrb.mxu3 %v502_v58  ;;  %452 = vmatpush.msrb.mxu1 %v406_v19 }
  0x49   :  { %607 = vmatpush.msrb.mxu3 %v500_v61  ;;  %453 = vmatpush.msrb.mxu1 %v405_v38  ;;  %v493_v38 = vld [vmem:[%s1798_s8 + $0x30] sm:$0xff] }
  0x4a   :  { %671 = vmatpush.msra.mxu0 %v493_v38 }
  0x4b   :  { %176 = vmatmul.f32.gmra.mxu0 %v65_v22  ;;  %258 = vmatmul.f32.gmra.mxu2 %v67_v23 }
  0x4c   :  { %608 = vmatpush.msrb.mxu3 %v498_v63 }
  0x4d   :  { %217 = vmatmul.f32.gmra.mxu1 %v66_v24 }
  0x4e   :  { %299 = vmatmul.f32.gmra.mxu3 %v68_v25 }
  0x4f   :  { %609 = vmatpush.msrb.mxu3 %v496_v2 }
  0x53   :  { %179 = vmatmul.f32.gmra.mxu0 %v69_v26  ;;  %261 = vmatmul.f32.gmra.mxu2 %v71_v27 }
  0x55   :  { %220 = vmatmul.f32.gmra.mxu1 %v70_v28 }
  0x56   :  { %302 = vmatmul.f32.gmra.mxu3 %v72_v29 }
  0x5b   :  { %182 = vmatmul.f32.gmra.mxu0 %v73_v30  ;;  %264 = vmatmul.f32.gmra.mxu2 %v75_v31 }
  0x5d   :  { %223 = vmatmul.f32.gmra.mxu1 %v74_v32 }
  0x5e   :  { %305 = vmatmul.f32.gmra.mxu3 %v76_v33 }
  0x63   :  { %941 = vmatmul.msk.f32.vlgmr.msrb.gmra.mxu0 %vm331_vm0, %v317_v34 }
  0x6b   :  { %942 = vmatmul.msk.f32.gmra.mxu0 %vm331_vm0, %v318_v35 }
  0x73   :  { %943 = vmatmul.msk.f32.gmra.mxu0 %vm331_vm0, %v319_v36 }
  0x7b   :  { %944 = vmatmul.msk.f32.gmra.mxu0 %vm331_vm0, %v320_v45 }
  0x83   :  { %945 = vmatmul.msk.f32.gmra.mxu0 %vm331_vm0, %v321_v50 }
  0x8b   :  { %946 = vmatmul.msk.f32.gmra.mxu0 %vm331_vm0, %v322_v59 }
  0x93   :  { %947 = vmatmul.msk.f32.gmra.mxu0 %vm331_vm0, %v323_v3 }
  0x9b   :  { %948 = vmatmul.msk.f32.gmra.mxu0 %vm331_vm0, %v324_v4 }
  0xa0   :  { %v162_v7 = vpop.f32.mrf.mxu0 }
  0xa1   :  { %v163_v8 = vadd.f32 %v1582_v6, %v162_v7 }
  0xa2   :  { %v203_v9 = vpop.f32.mrf.mxu1 }
  0xa3   :  { %v204_v10 = vadd.f32 %v203_v9, %v163_v8 }
  0xa6   :  { %v244_v11 = vpop.f32.mrf.mxu2 }
  0xa7   :  { %v245_v12 = vadd.f32 %v244_v11, %v204_v10 }
  0xa8   :  { %v165_v13 = vpop.f32.mrf.mxu0 }
  0xa9   :  { %v166_v14 = vadd.f32 %v1582_v6, %v165_v13  ;;  %v285_v15 = vpop.f32.mrf.mxu3  ;;  %v1003_v13 = vld [vmem:[%s1795_s5] ss:$0 sm:$0xff] }
  0xaa   :  { %v286_v16 = vadd.f32 %v285_v15, %v245_v12  ;;  %v206_v17 = vpop.f32.mrf.mxu1 }
  0xab   :  { %v207_v20 = vadd.f32 %v206_v17, %v166_v14 }
  0xac   :  { %v309_v18 = vmax.f32 %v286_v16, 0.0 }
  0xae   :  { %958 = vmatmul.msk.f32.vlgmr.msrb.gmra.mxu2 %vm521_vm2, %v309_v18  ;;  %967 = vmatmul.msk.f32.vlgmr.msrb.gmra.mxu3 %vm521_vm2, %v309_v18  ;;  %v247_v21 = vpop.f32.mrf.mxu2 }
  0xaf   :  { %v248_v22 = vadd.f32 %v247_v21, %v207_v20 }
  0xb0   :  { %v168_v23 = vpop.f32.mrf.mxu0 }
  0xb1   :  { %v169_v24 = vadd.f32 %v1582_v6, %v168_v23  ;;  %v288_v25 = vpop.f32.mrf.mxu3 }
  0xb2   :  { %v289_v26 = vadd.f32 %v288_v25, %v248_v22  ;;  %v209_v27 = vpop.f32.mrf.mxu1 }
  0xb3   :  { %v210_v29 = vadd.f32 %v209_v27, %v169_v24 }
  0xb4   :  { %v310_v28 = vmax.f32 %v289_v26, 0.0 }
  0xb6   :  { %959 = vmatmul.msk.f32.gmra.mxu2 %vm521_vm2, %v310_v28  ;;  %968 = vmatmul.msk.f32.gmra.mxu3 %vm521_vm2, %v310_v28  ;;  %v250_v30 = vpop.f32.mrf.mxu2 }
  0xb7   :  { %v251_v31 = vadd.f32 %v250_v30, %v210_v29 }
  0xb8   :  { %v171_v32 = vpop.f32.mrf.mxu0 }
  0xb9   :  { %v172_v33 = vadd.f32 %v1582_v6, %v171_v32  ;;  %v291_v34 = vpop.f32.mrf.mxu3 }
  0xba   :  { %v292_v35 = vadd.f32 %v291_v34, %v251_v31  ;;  %v212_v36 = vpop.f32.mrf.mxu1 }
  0xbb   :  { %v213_v39 = vadd.f32 %v212_v36, %v172_v33 }
  0xbc   :  { %v311_v37 = vmax.f32 %v292_v35, 0.0 }
  0xbe   :  { %960 = vmatmul.msk.f32.gmra.mxu2 %vm521_vm2, %v311_v37  ;;  %969 = vmatmul.msk.f32.gmra.mxu3 %vm521_vm2, %v311_v37  ;;  %v253_v40 = vpop.f32.mrf.mxu2 }
  0xbf   :  { %v254_v41 = vadd.f32 %v253_v40, %v213_v39  ;;  %v494_v39 = vld [vmem:[%s1798_s8 + $0x38] sm:$0xff] }
  0xc0   :  { %v174_v42 = vpop.f32.mrf.mxu0  ;;  %712 = vmatpush.msra.mxu1 %v494_v39 }
  0xc1   :  { %v175_v43 = vadd.f32 %v1582_v6, %v174_v42  ;;  %v294_v44 = vpop.f32.mrf.mxu3 }
  0xc2   :  { %v295_v45 = vadd.f32 %v294_v44, %v254_v41  ;;  %v215_v46 = vpop.f32.mrf.mxu1  ;;  %v491_v44 = vld [vmem:[%s1798_s8 + $0x20] sm:$0xff] }
  0xc3   :  { %v216_v48 = vadd.f32 %v215_v46, %v175_v43  ;;  %672 = vmatpush.msra.mxu0 %v491_v44  ;;  %v489_v46 = vld [vmem:[%s1798_s8 + $0x10] sm:$0xff] }
  0xc4   :  { %v312_v47 = vmax.f32 %v295_v45, 0.0  ;;  %v492_v45 = vld [vmem:[%s1798_s8 + $0x28] sm:$0xff] }
  0xc5   :  { %713 = vmatpush.msra.mxu1 %v492_v45  ;;  %673 = vmatpush.msra.mxu0 %v489_v46 }
  0xc6   :  { %961 = vmatmul.msk.f32.gmra.mxu2 %vm521_vm2, %v312_v47  ;;  %970 = vmatmul.msk.f32.gmra.mxu3 %vm521_vm2, %v312_v47  ;;  %v256_v49 = vpop.f32.mrf.mxu2  ;;  %v490_v47 = vld [vmem:[%s1798_s8 + $0x18] sm:$0xff] }
  0xc7   :  { %v257_v50 = vadd.f32 %v256_v49, %v216_v48  ;;  %714 = vmatpush.msra.mxu1 %v490_v47  ;;  %v487_v48 = vld [vmem:[%s1798_s8] sm:$0xff]  ;;  %v488_v49 = vld [vmem:[%s1798_s8 + $0x8] sm:$0xff]  ;;  %s929_s8 = sshll.u32 %s1803_s13, 4  ;;  %s930_s8 = int_to_ptr.hbm [resolvable:$true] %s929_s8 }
  0xc8   :  { %v177_v51 = vpop.f32.mrf.mxu0  ;;  %674 = vmatpush.msra.mxu0 %v487_v48 }
  0xc9   :  { %v178_v52 = vadd.f32 %v1582_v6, %v177_v51  ;;  %v297_v53 = vpop.f32.mrf.mxu3  ;;  %715 = vmatpush.msra.mxu1 %v488_v49 }
  0xca   :  { %v298_v54 = vadd.f32 %v297_v53, %v257_v50  ;;  %v218_v55 = vpop.f32.mrf.mxu1  ;;  %v1652_v50 = vld [vmem:[%s1797_s7] ss:$0 sm:$0xff] }
  0xcb   :  { %v219_v57 = vadd.f32 %v218_v55, %v178_v52 }
  0xcc   :  { %v313_v56 = vmax.f32 %v298_v54, 0.0 }
  0xce   :  { %962 = vmatmul.msk.f32.gmra.mxu2 %vm521_vm2, %v313_v56  ;;  %971 = vmatmul.msk.f32.gmra.mxu3 %vm521_vm2, %v313_v56  ;;  %v259_v58 = vpop.f32.mrf.mxu2 }
  0xcf   :  { %v260_v59 = vadd.f32 %v259_v58, %v219_v57 }
  0xd0   :  { %v180_v60 = vpop.f32.mrf.mxu0 }
  0xd1   :  { %v181_v61 = vadd.f32 %v1582_v6, %v180_v60  ;;  %v300_v62 = vpop.f32.mrf.mxu3 }
  0xd2   :  { %v301_v63 = vadd.f32 %v300_v62, %v260_v59  ;;  %v221_v0 = vpop.f32.mrf.mxu1 }
  0xd3   :  { %v222_v2 = vadd.f32 %v221_v0, %v181_v61 }
  0xd4   :  { %v314_v1 = vmax.f32 %v301_v63, 0.0 }
  0xd6   :  { %963 = vmatmul.msk.f32.gmra.mxu2 %vm521_vm2, %v314_v1  ;;  %972 = vmatmul.msk.f32.gmra.mxu3 %vm521_vm2, %v314_v1  ;;  %v262_v3 = vpop.f32.mrf.mxu2  ;;  %v794_v1 = vld [vmem:[%s1801_s11 + $0x78] sm:$0xff] }
  0xd7   :  { %v263_v4 = vadd.f32 %v262_v3, %v222_v2  ;;  %v803_v2 = vld [vmem:[%s1801_s11 + $0xc0] sm:$0xff]  ;;  %v793_v3 = vld [vmem:[%s1801_s11 + $0x70] sm:$0xff]  ;;  %833 = vmatpush.msra.mxu2 %v794_v1 }
  0xd8   :  { %v183_v5 = vpop.f32.mrf.mxu0  ;;  %881 = vmatpush.msra.mxu3 %v803_v2 }
  0xd9   :  { %v184_v7 = vadd.f32 %v1582_v6, %v183_v5  ;;  %v303_v8 = vpop.f32.mrf.mxu3  ;;  %v792_v5 = vld [vmem:[%s1801_s11 + $0x68] sm:$0xff]  ;;  %834 = vmatpush.msra.mxu2 %v793_v3 }
  0xda   :  { %v304_v9 = vadd.f32 %v303_v8, %v263_v4  ;;  %v224_v10 = vpop.f32.mrf.mxu1  ;;  %v802_v4 = vld [vmem:[%s1801_s11 + $0xb8] sm:$0xff]  ;;  %v791_v8 = vld [vmem:[%s1801_s11 + $0x60] sm:$0xff] }
  0xdb   :  { %v225_v12 = vadd.f32 %v224_v10, %v184_v7  ;;  %v801_v7 = vld [vmem:[%s1801_s11 + $0xb0] sm:$0xff]  ;;  %882 = vmatpush.msra.mxu3 %v802_v4  ;;  %835 = vmatpush.msra.mxu2 %v792_v5 }
  0xdc   :  { %v315_v11 = vmax.f32 %v304_v9, 0.0  ;;  %v800_v9 = vld [vmem:[%s1801_s11 + $0xa8] sm:$0xff] }
  0xdd   :  { %883 = vmatpush.msra.mxu3 %v801_v7  ;;  %836 = vmatpush.msra.mxu2 %v791_v8 }
  0xde   :  { %964 = vmatmul.msk.f32.gmra.mxu2 %vm521_vm2, %v315_v11  ;;  %973 = vmatmul.msk.f32.gmra.mxu3 %vm521_vm2, %v315_v11  ;;  %v265_v14 = vpop.f32.mrf.mxu2  ;;  %v790_v11 = vld [vmem:[%s1801_s11 + $0x58] sm:$0xff] }
  0xdf   :  { %v266_v15 = vadd.f32 %v265_v14, %v225_v12  ;;  %v799_v12 = vld [vmem:[%s1801_s11 + $0xa0] sm:$0xff]  ;;  %884 = vmatpush.msra.mxu3 %v800_v9  ;;  %837 = vmatpush.msra.mxu2 %v790_v11 }
  0xe0   :  { %v373_v16 = vpop.f32.mrf.mxu0 }
  0xe1   :  { %v306_v17 = vpop.f32.mrf.mxu3  ;;  %v374_v18 = vadd.f32 %v1003_v13, %v373_v16  ;;  %v798_v16 = vld [vmem:[%s1801_s11 + $0x98] sm:$0xff]  ;;  %885 = vmatpush.msra.mxu3 %v799_v12 }
  0xe2   :  { %v307_v19 = vadd.f32 %v306_v17, %v266_v15  ;;  %v789_v15 = vld [vmem:[%s1801_s11 + $0x50] sm:$0xff]  ;;  %v788_v17 = vld [vmem:[%s1801_s11 + $0x48] sm:$0xff] }
  0xe3   :  { %1006 = vtanh.f32 %v374_v18  ;;  %v797_v18 = vld [vmem:[%s1801_s11 + $0x90] sm:$0xff]  ;;  %838 = vmatpush.msra.mxu2 %v789_v15  ;;  %886 = vmatpush.msra.mxu3 %v798_v16 }
  0xe4   :  { %v316_v6 = vmax.f32 %v307_v19, 0.0  ;;  %v787_v19 = vld [vmem:[%s1801_s11 + $0x40] sm:$0xff] }
  0xe5   :  { %839 = vmatpush.msra.mxu2 %v788_v17  ;;  %887 = vmatpush.msra.mxu3 %v797_v18 }
  0xe6   :  { %965 = vmatmul.msk.f32.gmra.mxu2 %vm521_vm2, %v316_v6  ;;  %974 = vmatmul.msk.f32.gmra.mxu3 %vm521_vm2, %v316_v6 }
  0xe7   :  { %840 = vmatpush.msra.mxu2 %v787_v19 }
  0xe8   :  { %v376_v20 = vpop.f32.mrf.mxu0 }
  0xe9   :  { %v1007_v21 = vpop.eup %1006  ;;  %v377_v22 = vadd.f32 %v1003_v13, %v376_v20  ;;  %v786_v20 = vld [vmem:[%s1801_s11 + $0x38] sm:$0xff] }
  0xea   :  { %949 = vmatmul.msk.f32.vlgmr.msrb.gmra.mxu1 %vm413_vm3, %v1007_v21  ;;  %841 = vmatpush.msra.mxu2 %v786_v20 }
  0xeb   :  { %1008 = vtanh.f32 %v377_v22 }
  0xf0   :  { %v379_v23 = vpop.f32.mrf.mxu0 }
  0xf1   :  { %v1009_v24 = vpop.eup %1008  ;;  %v380_v25 = vadd.f32 %v1003_v13, %v379_v23  ;;  %v785_v23 = vld [vmem:[%s1801_s11 + $0x30] sm:$0xff] }
  0xf2   :  { %950 = vmatmul.msk.f32.gmra.mxu1 %vm413_vm3, %v1009_v24  ;;  %v784_v24 = vld [vmem:[%s1801_s11 + $0x28] sm:$0xff]  ;;  %842 = vmatpush.msra.mxu2 %v785_v23 }
  0xf3   :  { %1010 = vtanh.f32 %v380_v25  ;;  %v783_v25 = vld [vmem:[%s1801_s11 + $0x20] sm:$0xff] }
  0xf4   :  { %843 = vmatpush.msra.mxu2 %v784_v24 }
  0xf6   :  { %844 = vmatpush.msra.mxu2 %v783_v25 }
  0xf8   :  { %v382_v26 = vpop.f32.mrf.mxu0 }
  0xf9   :  { %v1011_v27 = vpop.eup %1010  ;;  %v383_v28 = vadd.f32 %v1003_v13, %v382_v26 }
  0xfa   :  { %951 = vmatmul.msk.f32.gmra.mxu1 %vm413_vm3, %v1011_v27  ;;  %v782_v27 = vld [vmem:[%s1801_s11 + $0x18] sm:$0xff] }
  0xfb   :  { %1012 = vtanh.f32 %v383_v28  ;;  %845 = vmatpush.msra.mxu2 %v782_v27 }
 0x100   :  { %v385_v29 = vpop.f32.mrf.mxu0 }
 0x101   :  { %v1013_v30 = vpop.eup %1012  ;;  %v386_v31 = vadd.f32 %v1003_v13, %v385_v29 }
 0x102   :  { %952 = vmatmul.msk.f32.gmra.mxu1 %vm413_vm3, %v1013_v30 }
 0x103   :  { %1014 = vtanh.f32 %v386_v31  ;;  %v781_v31 = vld [vmem:[%s1801_s11 + $0x10] sm:$0xff] }
 0x104   :  { %846 = vmatpush.msra.mxu2 %v781_v31 }
 0x108   :  { %v388_v32 = vpop.f32.mrf.mxu0 }
 0x109   :  { %v1015_v33 = vpop.eup %1014  ;;  %v389_v34 = vadd.f32 %v1003_v13, %v388_v32  ;;  %v796_v32 = vld [vmem:[%s1801_s11 + $0x88] sm:$0xff] }
 0x10a   :  { %953 = vmatmul.msk.f32.gmra.mxu1 %vm413_vm3, %v1015_v33  ;;  %v780_v33 = vld [vmem:[%s1801_s11 + $0x8] sm:$0xff]  ;;  %888 = vmatpush.msra.mxu3 %v796_v32 }
 0x10b   :  { %1016 = vtanh.f32 %v389_v34  ;;  %v795_v34 = vld [vmem:[%s1801_s11 + $0x80] sm:$0xff]  ;;  %847 = vmatpush.msra.mxu2 %v780_v33 }
 0x10c   :  { %889 = vmatpush.msra.mxu3 %v795_v34 }
 0x110   :  { %v391_v35 = vpop.f32.mrf.mxu0 }
 0x111   :  { %v1017_v36 = vpop.eup %1016  ;;  %v392_v37 = vadd.f32 %v1003_v13, %v391_v35  ;;  %v779_v35 = vld [vmem:[%s1801_s11] sm:$0xff] }
 0x112   :  { %954 = vmatmul.msk.f32.gmra.mxu1 %vm413_vm3, %v1017_v36  ;;  %848 = vmatpush.msra.mxu2 %v779_v35 }
 0x113   :  { %1018 = vtanh.f32 %v392_v37 }
 0x118   :  { %v394_v40 = vpop.f32.mrf.mxu0 }
 0x119   :  { %v1019_v41 = vpop.eup %1018  ;;  %v395_v42 = vadd.f32 %v1003_v13, %v394_v40  ;;  %v741_v40 = vld [vmem:[%s1800_s10] sm:$0x3] }
 0x11a   :  { %955 = vmatmul.msk.f32.gmra.mxu1 %vm413_vm3, %v1019_v41  ;;  %v1756_v41 = vperm.slane %v741_v40, 0 }
 0x11b   :  { %1020 = vtanh.f32 %v395_v42  ;;  %v1758_v42 = vperm.slane %v741_v40, 1 }
 0x121   :  { %v1021_v43 = vpop.eup %1020 }
 0x122   :  { %956 = vmatmul.msk.f32.gmra.mxu1 %vm413_vm3, %v1021_v43 }
 0x131   :  { %v570_v36 = vpop.f32.mrf.mxu2  ;;  %v611_v37 = vpop.f32.mrf.mxu3 }
 0x139   :  { %v573_v38 = vpop.f32.mrf.mxu2  ;;  %v614_v39 = vpop.f32.mrf.mxu3 }
 0x141   :  { %v576_v49 = vpop.f32.mrf.mxu2 }
 0x167   :  { %v455_v51 = vpop.f32.mrf.mxu1 }
 0x168   :  { %v456_v52 = vadd.f32 %v1652_v50, %v455_v51 }
 0x16a   :  { %1022 = vtanh.f32 %v456_v52 }
 0x16f   :  { %v458_v53 = vpop.f32.mrf.mxu1 }
 0x170   :  { %v1023_v54 = vpop.eup %1022  ;;  %v459_v55 = vadd.f32 %v1652_v50, %v458_v53 }
 0x171   :  { %975 = vmatmul.msk.f32.vlgmr.msra.gmra.mxu0 %vm413_vm3, %v1023_v54  ;;  %983 = vmatmul.msk.f32.vlgmr.msra.gmra.mxu1 %vm413_vm3, %v1023_v54 }
 0x172   :  { %1024 = vtanh.f32 %v459_v55 }
 0x177   :  { %v461_v56 = vpop.f32.mrf.mxu1 }
 0x178   :  { %v1025_v57 = vpop.eup %1024  ;;  %v462_v58 = vadd.f32 %v1652_v50, %v461_v56 }
 0x179   :  { %976 = vmatmul.msk.f32.gmra.mxu0 %vm413_vm3, %v1025_v57  ;;  %984 = vmatmul.msk.f32.gmra.mxu1 %vm413_vm3, %v1025_v57 }
 0x17a   :  { %1026 = vtanh.f32 %v462_v58 }
 0x17f   :  { %v464_v59 = vpop.f32.mrf.mxu1 }
 0x180   :  { %v1027_v60 = vpop.eup %1026  ;;  %v465_v61 = vadd.f32 %v1652_v50, %v464_v59  ;;  %v579_v59 = vpop.f32.mrf.mxu2 }
 0x181   :  { %977 = vmatmul.msk.f32.gmra.mxu0 %vm413_vm3, %v1027_v60  ;;  %985 = vmatmul.msk.f32.gmra.mxu1 %vm413_vm3, %v1027_v60 }
 0x182   :  { %1028 = vtanh.f32 %v465_v61 }
 0x187   :  { %v467_v62 = vpop.f32.mrf.mxu1 }
 0x188   :  { %v1029_v63 = vpop.eup %1028  ;;  %v468_v0 = vadd.f32 %v1652_v50, %v467_v62  ;;  %v582_v8 = vpop.f32.mrf.mxu2 }
 0x189   :  { %978 = vmatmul.msk.f32.gmra.mxu0 %vm413_vm3, %v1029_v63  ;;  %986 = vmatmul.msk.f32.gmra.mxu1 %vm413_vm3, %v1029_v63 }
 0x18a   :  { %1030 = vtanh.f32 %v468_v0 }
 0x18f   :  { %v470_v10 = vpop.f32.mrf.mxu1 }
 0x190   :  { %v1031_v13 = vpop.eup %1030  ;;  %v471_v14 = vadd.f32 %v1652_v50, %v470_v10  ;;  %v585_v20 = vpop.f32.mrf.mxu2 }
 0x191   :  { %979 = vmatmul.msk.f32.gmra.mxu0 %vm413_vm3, %v1031_v13  ;;  %987 = vmatmul.msk.f32.gmra.mxu1 %vm413_vm3, %v1031_v13 }
 0x192   :  { %1032 = vtanh.f32 %v471_v14 }
 0x197   :  { %v473_v6 = vpop.f32.mrf.mxu1 }
 0x198   :  { %v1033_v21 = vpop.eup %1032  ;;  %v474_v22 = vadd.f32 %v1652_v50, %v473_v6  ;;  %v588_v33 = vpop.f32.mrf.mxu2 }
 0x199   :  { %980 = vmatmul.msk.f32.gmra.mxu0 %vm413_vm3, %v1033_v21  ;;  %988 = vmatmul.msk.f32.gmra.mxu1 %vm413_vm3, %v1033_v21 }
 0x19a   :  { %1034 = vtanh.f32 %v474_v22 }
 0x19f   :  { %v476_v26 = vpop.f32.mrf.mxu1 }
 0x1a0   :  { %v1035_v28 = vpop.eup %1034  ;;  %v477_v29 = vadd.f32 %v1652_v50, %v476_v26  ;;  %v617_v50 = vpop.f32.mrf.mxu3 }
 0x1a1   :  { %981 = vmatmul.msk.f32.gmra.mxu0 %vm413_vm3, %v1035_v28  ;;  %989 = vmatmul.msk.f32.gmra.mxu1 %vm413_vm3, %v1035_v28 }
 0x1a2   :  { %1036 = vtanh.f32 %v477_v29 }
 0x1a8   :  { %v1037_v30 = vpop.eup %1036  ;;  %v620_v60 = vpop.f32.mrf.mxu3 }
 0x1a9   :  { %982 = vmatmul.msk.f32.gmra.mxu0 %vm413_vm3, %v1037_v30  ;;  %990 = vmatmul.msk.f32.gmra.mxu1 %vm413_vm3, %v1037_v30 }
 0x1b0   :  { %v623_v9 = vpop.f32.mrf.mxu3 }
 0x1b8   :  { %v626_v21 = vpop.f32.mrf.mxu3 }
 0x1c0   :  { %v629_v34 = vpop.f32.mrf.mxu3 }
 0x1ee   :  { %v676_v43 = vpop.f32.mrf.mxu0  ;;  %v717_v44 = vpop.f32.mrf.mxu1 }
 0x1ef   :  { %v677_v45 = vadd.f32 %v676_v43, %v570_v36  ;;  %v718_v46 = vadd.f32 %v717_v44, %v611_v37 }
 0x1f1   :  { %v747_v47 = vadd.f32 %v1756_v41, %v677_v45  ;;  %v748_v48 = vadd.f32 %v1758_v42, %v718_v46  ;;  %v591_v45 = vpop.f32.mrf.mxu2  ;;  %v632_v46 = vpop.f32.mrf.mxu3 }
 0x1f3   :  { %1038 = vtanh.f32 %v747_v47 }
 0x1f4   :  { %1040 = vtanh.f32 %v748_v48 }
 0x1f6   :  { %v679_v51 = vpop.f32.mrf.mxu0  ;;  %v720_v52 = vpop.f32.mrf.mxu1 }
 0x1f7   :  { %v680_v53 = vadd.f32 %v679_v51, %v573_v38  ;;  %v721_v54 = vadd.f32 %v720_v52, %v614_v39 }
 0x1f9   :  { %v1039_v55 = vpop.eup %1038  ;;  %v749_v56 = vadd.f32 %v1756_v41, %v680_v53  ;;  %v750_v57 = vadd.f32 %v1758_v42, %v721_v54 }
 0x1fa   :  { %v1041_v58 = vpop.eup %1040  ;;  %849 = vmatmul.f32.vlgmr.msra.gmra.mxu2 %v1039_v55 }
 0x1fb   :  { %1042 = vtanh.f32 %v749_v56  ;;  %991 = vmatmul.msk.f32.vlgmr.msra.gmra.mxu3 %vm808_vm4, %v1041_v58 }
 0x1fc   :  { %1044 = vtanh.f32 %v750_v57  ;;  %v1005_v57 = vld [vmem:[%s1802_s12] ss:$0 sm:$0xff]  ;;  %s1096_s12 = smov [#allocation2]  }
 0x1fd   :  { %s927_s19 = sshll.u32 %s1096_s12, 4  ;;  %s928_s19 = int_to_ptr.vmem [resolvable:$true] %s927_s19 }
 0x1fe   :  { %v682_v61 = vpop.f32.mrf.mxu0  ;;  %v723_v62 = vpop.f32.mrf.mxu1 }
 0x1ff   :  { %v683_v63 = vadd.f32 %v682_v61, %v576_v49  ;;  %v724_v0 = vadd.f32 %v723_v62, %v617_v50 }
 0x201   :  { %v1043_v1 = vpop.eup %1042  ;;  %v751_v2 = vadd.f32 %v1756_v41, %v683_v63  ;;  %v752_v3 = vadd.f32 %v1758_v42, %v724_v0 }
 0x202   :  { %v1045_v4 = vpop.eup %1044  ;;  %852 = vmatmul.f32.gmra.mxu2 %v1043_v1 }
 0x203   :  { %1046 = vtanh.f32 %v751_v2  ;;  %992 = vmatmul.msk.f32.gmra.mxu3 %vm808_vm4, %v1045_v4 }
 0x204   :  { %1048 = vtanh.f32 %v752_v3 }
 0x206   :  { %v685_v5 = vpop.f32.mrf.mxu0  ;;  %v726_v7 = vpop.f32.mrf.mxu1 }
 0x207   :  { %v686_v10 = vadd.f32 %v685_v5, %v579_v59  ;;  %v727_v11 = vadd.f32 %v726_v7, %v620_v60 }
 0x209   :  { %v1047_v12 = vpop.eup %1046  ;;  %v753_v13 = vadd.f32 %v1756_v41, %v686_v10  ;;  %v754_v14 = vadd.f32 %v1758_v42, %v727_v11 }
 0x20a   :  { %v1049_v15 = vpop.eup %1048  ;;  %855 = vmatmul.f32.gmra.mxu2 %v1047_v12 }
 0x20b   :  { %1050 = vtanh.f32 %v753_v13  ;;  %993 = vmatmul.msk.f32.gmra.mxu3 %vm808_vm4, %v1049_v15 }
 0x20c   :  { %1052 = vtanh.f32 %v754_v14 }
 0x20e   :  { %v688_v16 = vpop.f32.mrf.mxu0  ;;  %v729_v17 = vpop.f32.mrf.mxu1 }
 0x20f   :  { %v689_v18 = vadd.f32 %v688_v16, %v582_v8  ;;  %v730_v19 = vadd.f32 %v729_v17, %v623_v9 }
 0x211   :  { %v1051_v6 = vpop.eup %1050  ;;  %v755_v22 = vadd.f32 %v1756_v41, %v689_v18  ;;  %v756_v23 = vadd.f32 %v1758_v42, %v730_v19 }
 0x212   :  { %v1053_v24 = vpop.eup %1052  ;;  %858 = vmatmul.f32.gmra.mxu2 %v1051_v6 }
 0x213   :  { %1054 = vtanh.f32 %v755_v22  ;;  %994 = vmatmul.msk.f32.gmra.mxu3 %vm808_vm4, %v1053_v24 }
 0x214   :  { %1056 = vtanh.f32 %v756_v23 }
 0x216   :  { %v691_v25 = vpop.f32.mrf.mxu0  ;;  %v732_v26 = vpop.f32.mrf.mxu1 }
 0x217   :  { %v692_v27 = vadd.f32 %v691_v25, %v585_v20  ;;  %v733_v28 = vadd.f32 %v732_v26, %v626_v21 }
 0x219   :  { %v1055_v29 = vpop.eup %1054  ;;  %v757_v30 = vadd.f32 %v1756_v41, %v692_v27  ;;  %v758_v31 = vadd.f32 %v1758_v42, %v733_v28 }
 0x21a   :  { %v1057_v32 = vpop.eup %1056  ;;  %861 = vmatmul.f32.gmra.mxu2 %v1055_v29 }
 0x21b   :  { %1058 = vtanh.f32 %v757_v30  ;;  %995 = vmatmul.msk.f32.gmra.mxu3 %vm808_vm4, %v1057_v32 }
 0x21c   :  { %1060 = vtanh.f32 %v758_v31 }
 0x21e   :  { %v694_v35 = vpop.f32.mrf.mxu0  ;;  %v735_v36 = vpop.f32.mrf.mxu1 }
 0x21f   :  { %v695_v37 = vadd.f32 %v694_v35, %v588_v33  ;;  %v736_v38 = vadd.f32 %v735_v36, %v629_v34 }
 0x221   :  { %v1059_v39 = vpop.eup %1058  ;;  %v759_v40 = vadd.f32 %v1756_v41, %v695_v37  ;;  %v760_v43 = vadd.f32 %v1758_v42, %v736_v38 }
 0x222   :  { %v1061_v44 = vpop.eup %1060  ;;  %864 = vmatmul.f32.gmra.mxu2 %v1059_v39 }
 0x223   :  { %1062 = vtanh.f32 %v759_v40  ;;  %996 = vmatmul.msk.f32.gmra.mxu3 %vm808_vm4, %v1061_v44 }
 0x224   :  { %1064 = vtanh.f32 %v760_v43 }
 0x226   :  { %v697_v47 = vpop.f32.mrf.mxu0  ;;  %v738_v48 = vpop.f32.mrf.mxu1 }
 0x227   :  { %v698_v49 = vadd.f32 %v697_v47, %v591_v45  ;;  %v739_v50 = vadd.f32 %v738_v48, %v632_v46 }
 0x229   :  { %v1063_v51 = vpop.eup %1062  ;;  %v761_v52 = vadd.f32 %v1756_v41, %v698_v49  ;;  %v762_v53 = vadd.f32 %v1758_v42, %v739_v50 }
 0x22a   :  { %v1065_v54 = vpop.eup %1064  ;;  %867 = vmatmul.f32.gmra.mxu2 %v1063_v51 }
 0x22b   :  { %1066 = vtanh.f32 %v761_v52  ;;  %997 = vmatmul.msk.f32.gmra.mxu3 %vm808_vm4, %v1065_v54 }
 0x22c   :  { %1068 = vtanh.f32 %v762_v53 }
 0x231   :  { %v1067_v55 = vpop.eup %1066 }
 0x232   :  { %v1069_v56 = vpop.eup %1068  ;;  %870 = vmatmul.f32.gmra.mxu2 %v1067_v55 }
 0x233   :  { %998 = vmatmul.msk.f32.gmra.mxu3 %vm808_vm4, %v1069_v56 }
 0x27d   :  { %v850_v58 = vpop.f32.mrf.mxu2 }
 0x27e   :  { %v851_v59 = vadd.f32 %v1005_v57, %v850_v58  ;;  %v891_v41 = vpop.f32.mrf.mxu3 }
 0x280   :  { %v892_v60 = vadd.f32 %v891_v41, %v851_v59 }
 0x282   :  { %915 = vst [vmem:[#allocation2] sm:$0xff] %v892_v60 }
 0x285   :  { %v853_v42 = vpop.f32.mrf.mxu2 }
 0x286   :  { %v854_v61 = vadd.f32 %v1005_v57, %v853_v42  ;;  %v894_v62 = vpop.f32.mrf.mxu3 }
 0x288   :  { %v895_v63 = vadd.f32 %v894_v62, %v854_v61 }
 0x28a   :  { %916 = vst [vmem:[#allocation2 + $0x8] sm:$0xff] %v895_v63 }
 0x28d   :  { %v856_v0 = vpop.f32.mrf.mxu2 }
 0x28e   :  { %v857_v1 = vadd.f32 %v1005_v57, %v856_v0  ;;  %v897_v2 = vpop.f32.mrf.mxu3 }
 0x290   :  { %v898_v3 = vadd.f32 %v897_v2, %v857_v1 }
 0x292   :  { %917 = vst [vmem:[#allocation2 + $0x10] sm:$0xff] %v898_v3 }
 0x295   :  { %v859_v4 = vpop.f32.mrf.mxu2 }
 0x296   :  { %v860_v5 = vadd.f32 %v1005_v57, %v859_v4  ;;  %v900_v7 = vpop.f32.mrf.mxu3 }
 0x298   :  { %v901_v8 = vadd.f32 %v900_v7, %v860_v5 }
 0x29a   :  { %918 = vst [vmem:[#allocation2 + $0x18] sm:$0xff] %v901_v8 }
 0x29d   :  { %v862_v9 = vpop.f32.mrf.mxu2 }
 0x29e   :  { %v863_v10 = vadd.f32 %v1005_v57, %v862_v9  ;;  %v903_v11 = vpop.f32.mrf.mxu3 }
 0x2a0   :  { %v904_v12 = vadd.f32 %v903_v11, %v863_v10 }
 0x2a2   :  { %919 = vst [vmem:[#allocation2 + $0x20] sm:$0xff] %v904_v12 }
 0x2a5   :  { %v865_v13 = vpop.f32.mrf.mxu2 }
 0x2a6   :  { %v866_v14 = vadd.f32 %v1005_v57, %v865_v13  ;;  %v906_v15 = vpop.f32.mrf.mxu3 }
 0x2a8   :  { %v907_v16 = vadd.f32 %v906_v15, %v866_v14 }
 0x2aa   :  { %920 = vst [vmem:[#allocation2 + $0x28] sm:$0xff] %v907_v16 }
 0x2ad   :  { %v868_v17 = vpop.f32.mrf.mxu2 }
 0x2ae   :  { %v869_v18 = vadd.f32 %v1005_v57, %v868_v17  ;;  %v909_v19 = vpop.f32.mrf.mxu3 }
 0x2b0   :  { %v910_v6 = vadd.f32 %v909_v19, %v869_v18 }
 0x2b2   :  { %921 = vst [vmem:[#allocation2 + $0x30] sm:$0xff] %v910_v6 }
 0x2b5   :  { %v871_v20 = vpop.f32.mrf.mxu2 }
 0x2b6   :  { %v872_v21 = vadd.f32 %v1005_v57, %v871_v20  ;;  %v912_v22 = vpop.f32.mrf.mxu3 }
 0x2b8   :  { %v913_v23 = vadd.f32 %v912_v22, %v872_v21 }
 0x2ba   :  { %922 = vst [vmem:[#allocation2 + $0x38] sm:$0xff] %v913_v23 }
 0x2bb   :  { %935 = dma.vmem_to_hbm [thread:$0]  %s928_s19, 1024, %s930_s8, [#allocation3], %s1097_s20, %s1097_s20, %s1098_s0  }
 0x2bc   :  { %1094 = dma.done.wait [#allocation3], 1024  }
 0x2bd   :  { %1095 = vsyncadd [#allocation3], 4294966272 }
 0x2be   :  { %940 = vsyncpa [#allocation3], 1 }

</bundles_post_ra>
